<compile_context>
chip_gen: v7x
topology: tpu7x:2x2x1
jax: 0.10.0
libtpu: 0.0.40
codegen_flags: <defaults>
</compile_context>

<pallas_src>
import functools

import jax
import jax.numpy as jnp
from jax.experimental import pallas as pl
from jax.experimental.pallas import tpu as pltpu

_EPS = 1e-5
_CLUMP_MIN = -50.0
_CLUMP_MAX = 50.0
_LANE = 128


def _round_up(x: int, m: int) -> int:
    return (x + m - 1) // m * m


def _choose_tile_b(B: int, n_in: int, x_bytes_per_elem: int,
                   vmem_stream_budget: int = 24 << 20) -> int:
    """Pick the batch tile.

    - VMEM cap: the double-buffered x tile (2 * tile_b * n_in * bytes) fits ~24 MiB, which is
      safe against the v7x 64-MiB VMEM (we request a 48-MiB scoped limit) and generous on
      v5e/v6e (128 MiB).
    - Split cap: tile_b <= round_up(cdiv(B, 2), 128) so there are >=2 grid steps whenever the
      batch allows it (feeds both TensorCores on v7x, lets double-buffering overlap).
    - tile_b is a multiple of 128 so the transposed outputs get unmasked lane-dense stores.
    """
    cap_vmem = vmem_stream_budget // (2 * max(n_in, 1) * x_bytes_per_elem)
    cap_vmem = max(_LANE, (cap_vmem // _LANE) * _LANE)
    cap_split = max(_LANE, _round_up(-(-B // 2), _LANE))
    return max(_LANE, min(cap_vmem, cap_split))


# --------------------------------------------------------------------------------------
# Kernel
# --------------------------------------------------------------------------------------
def _universal_kernel(x_ref, yT_ref, wT_ref, bT_ref, predT_ref, lpart_ref, *,
                      batch, tile_b, precision):
    """One batch tile.

    x_ref     : (tile_b, n_in)   raw features (streamed, true n_in, no padding)
    yT_ref    : (n_out, tile_b)  labels, batch on the lane axis, f32
    wT_ref    : (n_out, n_in)    BN-folded Linear weight (resident across the grid)
    bT_ref    : (n_out, 1)       BN-folded Linear bias, f32 (resident)
    predT_ref : (n_out, tile_b)  out: sigmoid(clamp(logits))            (predict())
    lpart_ref : (1, tile_b)      out: per-example BCE partial sums      (forward() loss)
    """
    i = pl.program_id(0)

    x = x_ref[...]
    w = wT_ref[...]
    if x.dtype != w.dtype:
        # bf16-weight path: cast the already-loaded tile in-kernel (x streamed raw from HBM).
        x = x.astype(w.dtype)

    # torch_model (Linear, BN pre-folded), transposed so batch lands on the 128-lane axis:
    #   logits^T = W' @ x^T  (contract the feature axis of both operands)
    logits = jax.lax.dot_general(
        w, x,
        dimension_numbers=(((1,), (1,)), ((), ())),
        preferred_element_type=jnp.float32,
        precision=precision,
    ) + bT_ref[...]                                          # (n_out, tile_b), f32

    # Shared-EUP epilogue: e = exp(-|clamp(z)|) feeds both the sigmoid and the BCE log term
    # (difference vs exp(-|z|) is < exp(-50), negligible).
    z = logits
    zc = jnp.clip(z, _CLUMP_MIN, _CLUMP_MAX)
    e = jnp.exp(-jnp.abs(zc))
    denom = 1.0 + e
    inv = 1.0 / denom                                        # exact divide: kernel is HBM-bound

    # predict(): sigmoid(Clump(logits))
    predT_ref[...] = jnp.where(zc >= 0.0, inv, e * inv)

    # forward(): BCEWithLogitsLoss(y, logits) on UNCLAMPED logits (loss_on_logits=True),
    # stable form max(z,0) - z*y + log(1 + exp(-|z|)).
    y = yT_ref[...]
    bce = jnp.maximum(z, 0.0) - z * y + jnp.log(denom)

    # Mask the ragged last batch tile (out-of-bounds input columns hold unspecified data).
    col = i * tile_b + jax.lax.broadcasted_iota(jnp.int32, bce.shape, 1)
    bce = jnp.where(col < batch, bce, 0.0)

    # Lane-wide partial sums (collapse only the tiny n_out sublane axis here);
    # the cross-lane collapse + mean happen once in the wrapper.
    lpart_ref[...] = jnp.sum(bce, axis=0, keepdims=True)     # (1, tile_b)


# --------------------------------------------------------------------------------------
# Host-side parameter transform (one-time): fold eval-mode BatchNorm1d into the Linear.
# --------------------------------------------------------------------------------------
def fold_batchnorm_into_linear(params, *, compute_dtype=jnp.float32):
    gamma, beta = params["bn_gamma"], params["bn_beta"]
    mean, var = params["bn_mean"], params["bn_var"]
    w, b = params["w"], params["b"]                     # (n_in, n_out), (n_out,)

    scale = gamma * jax.lax.rsqrt(var + _EPS)           # (n_in,)
    w_fold = w * scale[:, None]                         # (n_in, n_out)
    b_fold = b + (beta - mean * scale) @ w              # (n_out,)

    n_out = w.shape[1]
    return {
        "wT": w_fold.T.astype(compute_dtype),           # (n_out, n_in)
        "bT": b_fold.reshape(n_out, 1).astype(jnp.float32),
    }


# --------------------------------------------------------------------------------------
# Wrapper:  returns (module.forward(inp) loss,  module.predict(inp) preds)
# --------------------------------------------------------------------------------------
@functools.partial(jax.jit, static_argnames=("tile_b", "precision"))
def universal_model_forward(x_cont, label, packed, *, tile_b=None,
                            precision=jax.lax.Precision.DEFAULT):
    B, n_in = x_cont.shape
    n_out = packed["wT"].shape[0]

    if tile_b is None:
        tile_b = _choose_tile_b(B, n_in, x_cont.dtype.itemsize)
    else:
        tile_b = max(_LANE, _round_up(int(tile_b), _LANE))
    num_tiles = pl.cdiv(B, tile_b)

    # inp['label'].view(B, -1) transposed so batch is on the lane axis
    # (for n_out == 1 this is just a reshape; no padded copy is built).
    yT = label.reshape(B, -1).astype(jnp.float32).T          # (n_out, B)

    kernel = functools.partial(_universal_kernel, batch=B, tile_b=tile_b,
                               precision=precision)

    x_bytes = B * n_in * x_cont.dtype.itemsize
    w_bytes = (packed["wT"].size * packed["wT"].dtype.itemsize
               + packed["bT"].size * 4)
    io_bytes = x_bytes + n_out * B * 4 + w_bytes + (n_out * B + B) * 4
    cost = pl.CostEstimate(
        flops=2 * B * n_in * n_out,
        transcendentals=2 * B * n_out,
        bytes_accessed=io_bytes,
    )

    predT, lpart = pl.pallas_call(
        kernel,
        grid=(num_tiles,),
        in_specs=[
            # x streamed raw from HBM, true feature width, double-buffered by Pallas.
            pl.BlockSpec((tile_b, n_in), lambda i: (i, 0)),
            # labels^T tile (batch on the lane axis).
            pl.BlockSpec((n_out, tile_b), lambda i: (0, i)),
            # Constant block index => W'/b' stay resident in VMEM (no re-DMA per grid step).
            pl.BlockSpec((n_out, n_in), lambda i: (0, 0)),
            pl.BlockSpec((n_out, 1), lambda i: (0, 0)),
        ],
        out_specs=(
            pl.BlockSpec((n_out, tile_b), lambda i: (0, i)),  # preds^T (lane-dense stores)
            pl.BlockSpec((1, tile_b), lambda i: (0, i)),      # per-example BCE partials
        ),
        out_shape=(
            jax.ShapeDtypeStruct((n_out, B), jnp.float32),
            jax.ShapeDtypeStruct((1, B), jnp.float32),
        ),
        compiler_params=pltpu.CompilerParams(
            dimension_semantics=("parallel",),       # both TCs on v7x; harmless on v5e/v6e
            vmem_limit_bytes=48 * 1024 * 1024,       # <=48 MiB: safe on v7x's 64-MiB VMEM
        ),
        cost_estimate=cost,
    )(x_cont, yT, packed["wT"], packed["bT"])

    # BCEWithLogitsLoss mean reduction over the true (unpadded) elements.
    loss = jnp.sum(lpart) / jnp.float32(B * n_out)
    preds = predT.T                                           # (B, n_out)
    return loss, preds


# --------------------------------------------------------------------------------------
# Synthetic parameters + pure-JAX reference
# --------------------------------------------------------------------------------------
def init_params(key, n_in, n_out):
    k_w, k_b, k_g, k_be, k_m, k_v = jax.random.split(key, 6)
    bound = 1.0 / (n_in ** 0.5)
    w = jax.random.uniform(k_w, (n_in, n_out), jnp.float32, -bound, bound)
    b = jax.random.uniform(k_b, (n_out,), jnp.float32, -bound, bound)
    gamma = 1.0 + 0.1 * jax.random.normal(k_g, (n_in,), jnp.float32)
    beta = 0.1 * jax.random.normal(k_be, (n_in,), jnp.float32)
    rmean = 0.5 * jax.random.normal(k_m, (n_in,), jnp.float32)
    rvar = jnp.abs(jax.random.normal(k_v, (n_in,), jnp.float32)) + 0.5
    return {"w": w, "b": b, "bn_gamma": gamma, "bn_beta": beta,
            "bn_mean": rmean, "bn_var": rvar}


def _reference(x_cont, label, params):
    """Unfused pure-JAX reference of the same forward/predict semantics."""
    xn = (x_cont - params["bn_mean"]) * jax.lax.rsqrt(params["bn_var"] + _EPS)
    xn = xn * params["bn_gamma"] + params["bn_beta"]
    logits = jnp.dot(xn, params["w"], precision=jax.lax.Precision.HIGHEST) + params["b"]
    y = label.reshape(label.shape[0], -1).astype(jnp.float32)
    z = logits
    bce = jnp.maximum(z, 0.0) - z * y + jnp.log1p(jnp.exp(-jnp.abs(z)))
    loss = jnp.mean(bce)
    preds = jax.nn.sigmoid(jnp.clip(logits, _CLUMP_MIN, _CLUMP_MAX))
    return loss, preds


if __name__ == "__main__":
    key = jax.random.PRNGKey(0)
    k_x, k_y, k_p = jax.random.split(key, 3)

    # Small shapes; B deliberately NOT a multiple of the batch tile to exercise the ragged mask.
    B, n_in, n_out = 250, 32, 1
    x_cont = jax.random.normal(k_x, (B, n_in), jnp.float32)            # inp['cont']
    label = (jax.random.uniform(k_y, (B,)) > 0.5).astype(jnp.float32)  # inp['label']
    params = init_params(k_p, n_in, n_out)

    ref_loss, ref_preds = _reference(x_cont, label, params)

    # --- exact-semantics check: f32 weights, full-precision MXU path, exact sigmoid ---
    packed32 = fold_batchnorm_into_linear(params, compute_dtype=jnp.float32)
    loss_hi, preds_hi = universal_model_forward(
        x_cont, label, packed32, precision=jax.lax.Precision.HIGHEST)
    jax.block_until_ready((loss_hi, preds_hi))
    assert jnp.allclose(loss_hi, ref_loss, atol=1e-4, rtol=1e-4), (loss_hi, ref_loss)
    assert jnp.allclose(preds_hi, ref_preds, atol=1e-4, rtol=1e-4)

    # --- performance config: DEFAULT MXU precision (single bf16 pass, f32 accumulate) ---
    loss_def, preds_def = universal_model_forward(x_cont, label, packed32)
    jax.block_until_ready((loss_def, preds_def))
    assert jnp.allclose(loss_def, ref_loss, atol=2e-2, rtol=2e-2), (loss_def, ref_loss)
    assert jnp.allclose(preds_def, ref_preds, atol=2e-2, rtol=2e-2)

    # --- bf16 resident weights; x still streamed raw f32 and cast in-kernel ---
    packed16 = fold_batchnorm_into_linear(params, compute_dtype=jnp.bfloat16)
    loss16, preds16 = universal_model_forward(x_cont, label, packed16)
    jax.block_until_ready((loss16, preds16))
    assert jnp.allclose(loss16, ref_loss, atol=3e-2, rtol=3e-2), (loss16, ref_loss)
    assert jnp.allclose(preds16, ref_preds, atol=3e-2, rtol=3e-2)

    print("KERNEL_OK")
</pallas_src>

<mosaic_0001>
module attributes {stable_mosaic.version = 11 : i64} {
  func.func @_universal_kernel(%arg0: i32, %arg1: memref<128x32xf32, #tpu.memory_space<vmem>>, %arg2: memref<1x128xf32, #tpu.memory_space<vmem>>, %arg3: memref<1x32xf32, #tpu.memory_space<vmem>>, %arg4: memref<1x1xf32, #tpu.memory_space<vmem>>, %arg5: memref<1x128xf32, #tpu.memory_space<vmem>>, %arg6: memref<1x128xf32, #tpu.memory_space<vmem>>) attributes {dimension_semantics = [#tpu.dimension_semantics<parallel>], iteration_bounds = array<i64: 2>, scalar_prefetch = 0 : i64, scratch_operands = 0 : i64, tpu.core_type = #tpu.core_type<tc>, window_params = [{transform_indices = @transform_0, window_bounds = array<i64: 128, 32>}, {transform_indices = @transform_1, window_bounds = array<i64: 1, 128>}, {pipeline_mode = #tpu.pipeline_mode<synchronous>, transform_indices = @transform_2, window_bounds = array<i64: 1, 32>}, {pipeline_mode = #tpu.pipeline_mode<synchronous>, transform_indices = @transform_3, window_bounds = array<i64: 1, 1>}, {transform_indices = @transform_4, window_bounds = array<i64: 1, 128>}, {transform_indices = @transform_5, window_bounds = array<i64: 1, 128>}]} {
    %c0 = arith.constant 0 : index
    %c0_0 = arith.constant 0 : index
    %0 = vector.load %arg1[%c0, %c0_0] : memref<128x32xf32, #tpu.memory_space<vmem>>, vector<128x32xf32>
    %c0_1 = arith.constant 0 : index
    %c0_2 = arith.constant 0 : index
    %1 = vector.load %arg3[%c0_1, %c0_2] : memref<1x32xf32, #tpu.memory_space<vmem>>, vector<1x32xf32>
    %cst = arith.constant dense<0.000000e+00> : vector<1x128xf32>
    %2 = tpu.matmul %1, %0, %cst {dimension_numbers = #tpu.dot_dimension_numbers<[1], [1], [0], [0], [0, 0, 1, 0], [], []>, precision = #tpu.contract_precision<fp32>} : vector<1x32xf32>, vector<128x32xf32>, vector<1x128xf32> -> vector<1x128xf32>
    %c0_3 = arith.constant 0 : index
    %c0_4 = arith.constant 0 : index
    %3 = vector.load %arg4[%c0_3, %c0_4] : memref<1x1xf32, #tpu.memory_space<vmem>>, vector<1x1xf32>
    %4 = vector.broadcast %3 : vector<1x1xf32> to vector<1x128xf32>
    %5 = arith.addf %2, %4 : vector<1x128xf32>
    %cst_5 = arith.constant -5.000000e+01 : f32
    %cst_6 = arith.constant 5.000000e+01 : f32
    %6 = vector.broadcast %cst_5 : f32 to vector<1x128xf32>
    %7 = arith.maximumf %6, %5 : vector<1x128xf32>
    %8 = vector.broadcast %cst_6 : f32 to vector<1x128xf32>
    %9 = arith.minimumf %8, %7 : vector<1x128xf32>
    %10 = math.absf %9 : vector<1x128xf32>
    %cst_7 = arith.constant 0.000000e+00 : f32
    %11 = vector.broadcast %cst_7 : f32 to vector<1x128xf32>
    %12 = arith.subf %11, %10 : vector<1x128xf32>
    %13 = math.exp %12 : vector<1x128xf32>
    %cst_8 = arith.constant 1.000000e+00 : f32
    %14 = vector.broadcast %cst_8 : f32 to vector<1x128xf32>
    %15 = arith.addf %14, %13 : vector<1x128xf32>
    %cst_9 = arith.constant 1.000000e+00 : f32
    %16 = vector.broadcast %cst_9 : f32 to vector<1x128xf32>
    %17 = arith.divf %16, %15 : vector<1x128xf32>
    %cst_10 = arith.constant 0.000000e+00 : f32
    %18 = vector.broadcast %cst_10 : f32 to vector<1x128xf32>
    %19 = arith.cmpf oge, %9, %18 : vector<1x128xf32>
    %20 = arith.mulf %13, %17 : vector<1x128xf32>
    %21 = arith.select %19, %17, %20 : vector<1x128xi1>, vector<1x128xf32>
    %c0_11 = arith.constant 0 : index
    %c0_12 = arith.constant 0 : index
    %22 = vector.load %arg5[%c0_11, %c0_12] : memref<1x128xf32, #tpu.memory_space<vmem>>, vector<1x128xf32>
    tpu.vector_store %arg5[%c0_11, %c0_12], %21 {strides = array<i32>} : memref<1x128xf32, #tpu.memory_space<vmem>>, vector<1x128xf32>,
    %c0_13 = arith.constant 0 : index
    %c0_14 = arith.constant 0 : index
    %23 = vector.load %arg2[%c0_13, %c0_14] : memref<1x128xf32, #tpu.memory_space<vmem>>, vector<1x128xf32>
    %cst_15 = arith.constant 0.000000e+00 : f32
    %24 = vector.broadcast %cst_15 : f32 to vector<1x128xf32>
    %25 = arith.maximumf %5, %24 : vector<1x128xf32>
    %26 = arith.mulf %5, %23 : vector<1x128xf32>
    %27 = arith.subf %25, %26 : vector<1x128xf32>
    %28 = math.log %15 : vector<1x128xf32>
    %29 = arith.addf %27, %28 : vector<1x128xf32>
    %c128_i32 = arith.constant 128 : i32
    %30 = arith.muli %arg0, %c128_i32 : i32
    %31 = tpu.iota {dimensions = array<i32: 1>} : vector<1x128xi32>
    %32 = vector.broadcast %30 : i32 to vector<1x128xi32>
    %33 = arith.addi %32, %31 : vector<1x128xi32>
    %c250_i32 = arith.constant 250 : i32
    %34 = vector.broadcast %c250_i32 : i32 to vector<1x128xi32>
    %35 = arith.cmpi slt, %33, %34 : vector<1x128xi32>
    %cst_16 = arith.constant 0.000000e+00 : f32
    %36 = vector.broadcast %cst_16 : f32 to vector<1x128xf32>
    %37 = arith.select %35, %29, %36 : vector<1x128xi1>, vector<1x128xf32>
    %cst_17 = arith.constant dense<0.000000e+00> : vector<128xf32>
    %38 = vector.multi_reduction <add>, %37, %cst_17 [0] : vector<1x128xf32> to vector<128xf32>
    %39 = vector.shape_cast %38 : vector<128xf32> to vector<1x128xf32>
    %c0_18 = arith.constant 0 : index
    %c0_19 = arith.constant 0 : index
    %40 = vector.load %arg6[%c0_18, %c0_19] : memref<1x128xf32, #tpu.memory_space<vmem>>, vector<1x128xf32>
    tpu.vector_store %arg6[%c0_18, %c0_19], %39 {strides = array<i32>} : memref<1x128xf32, #tpu.memory_space<vmem>>, vector<1x128xf32>,
    return
  }
  func.func @transform_0(%arg0: i32) -> (i32, i32) {
    %c0_i32 = arith.constant 0 : i32
    %c0_i32_0 = arith.constant 0 : i32
    return %arg0, %c0_i32 : i32, i32
  }
  func.func @transform_1(%arg0: i32) -> (i32, i32) {
    %c0_i32 = arith.constant 0 : i32
    %c0_i32_0 = arith.constant 0 : i32
    return %c0_i32, %arg0 : i32, i32
  }
  func.func @transform_2(%arg0: i32) -> (i32, i32) {
    %c0_i32 = arith.constant 0 : i32
    %c0_i32_0 = arith.constant 0 : i32
    %c0_i32_1 = arith.constant 0 : i32
    return %c0_i32, %c0_i32_0 : i32, i32
  }
  func.func @transform_3(%arg0: i32) -> (i32, i32) {
    %c0_i32 = arith.constant 0 : i32
    %c0_i32_0 = arith.constant 0 : i32
    %c0_i32_1 = arith.constant 0 : i32
    return %c0_i32, %c0_i32_0 : i32, i32
  }
  func.func @transform_4(%arg0: i32) -> (i32, i32) {
    %c0_i32 = arith.constant 0 : i32
    %c0_i32_0 = arith.constant 0 : i32
    return %c0_i32, %arg0 : i32, i32
  }
  func.func @transform_5(%arg0: i32) -> (i32, i32) {
    %c0_i32 = arith.constant 0 : i32
    %c0_i32_0 = arith.constant 0 : i32
    return %c0_i32, %arg0 : i32, i32
  }
}

</mosaic_0001>

<bundles_post_ra>
// kernel: universal_model_forward.1
= control target key start
LH: loop header
LB: loop body
LE: loop exit
PB: predicated region body
PF: predicated region fallthrough
CT: control target
= control target key end

     0   :  { %s2104_s0 = inlined_call_operand.vmem [shape: f32[250,32], index: 0, kind: input, shape index: {}]   ;;  %s2105_s1 = inlined_call_operand.vmem [shape: f32[1,250], index: 1, kind: input, shape index: {}]   ;;  %s2106_s2 = inlined_call_operand.vmem [shape: f32[1,32], index: 2, kind: input, shape index: {}]   ;;  %s2107_s3 = inlined_call_operand.<no memory space> [shape: f32[1,1], index: 3, kind: input, shape index: {}]   ;;  %s2108_s4 = inlined_call_operand.hbm [shape: f32[1,250], index: 4, kind: output, shape index: {0}]   ;;  %s2109_s5 = inlined_call_operand.vmem [shape: f32[1,250], index: 5, kind: output, shape index: {1}]  }
   0x1   :  { %v11_v0 = vstv %s2107_s3 }
   0x2   :  { %12 = vst [vmem:[#allocation2] sm:$0x1] %v11_v0 }
   0x3   :  { %13 = vsyncpa [#allocation4], 0 }
   0x4   :  { %15 = vsyncpa [#allocation4 + $0x1], 0  ;;  %s1729_s20 = smov 0   ;;  %s1731_s21 = smov 0  }
   0x5   :  { %s1733_s22 = smov 0   ;;  %s1735_s23 = smov 0  }
   0x6 LB: > { %s1750_s3 = sadd.s32 4294967295, %s1689_s23   ;;  %s1100_s24 = sadd.s32 4294967294, %s1689_s23   ;;  %s1689_s23 = sphi %s1735_s23, %s2115_s23   ;;  %s1685_s22 = sphi %s1733_s22, %s2114_s22   ;;  %s1681_s21 = sphi %s1731_s21, %s2113_s21   ;;  %s1677_s20 = sphi %s1729_s20, %s2112_s20  }
   0x7   : > { %s1754_s25 = sadd.s32 1, %s1689_s23   ;;  %s122_s26 = sadd.s32 1, %s1685_s22 }
   0x8   : > { %s119_s27 = ssub.s32 %s1689_s23, %s1754_s25  ;;  %p132_p0 = scmp.ne.s32.totalorder %s1685_s22, %s1681_s21 }
   0x9   : > { %p120_p1 = scmp.eq.s32.totalorder %s119_s27, 0  ;;  %p133_p2 = scmp.eq.s32.totalorder %s1750_s3, 1 }
   0xa   : > { %p138_p3 = scmp.ne.s32.totalorder %s1681_s21, %s1677_s20  ;;  %p139_p4 = scmp.eq.s32.totalorder %s1100_s24, 1 }
   0xb   : > { %s1765_s28 = scalar_select %p120_p1, %s1685_s22, %s122_s26  }
   0xc   : > { %p1767_p5 = por %p133_p2, %p132_p0  ;;  %p1771_p6 = por %p139_p4, %p138_p3 }
   0xd   : > { %p1103_p7 = scmp.ge.s32.totalorder %s1689_s23, 1  ;;  %p204_p8 = scmp.lt.s32.totalorder %s1689_s23, 3 }
   0xf   : > { %p205_p9 = pnand %p1103_p7, %p204_p8 }
  0x10   : > { %s1778_s6 = sshll.u32 (!%p205_p9), %s1750_s3, 4  ;;  %v1691_v1 = vmov (!%p205_p9), 0.0|0.0   ;;  %vm1692_vm0 = vmmov (!%p205_p9), 0   ;;  %v1693_v2 = vmov (!%p205_p9), 0.0   ;;  %vm276_vm1 = vcmask (!%p205_p9), 261120   ;;  %p243_p11 = scmp.lt.s32.totalorder (!%p205_p9), %s1750_s3, 1 }
  0x11   : > { %208 = sbr.rel (%p205_p9) target bundleno = 491 (0x1eb), region = 36  ;;  %1423 = vmatprep.subr.bf16.mxu1 (!%p205_p9), %v1691_v1  ;;  %1495 = vmatprep.subr.bf16.mxu0 (!%p205_p9), %v1691_v1  ;;  %p238_p10 = scmp.lt.s32.totalorder (!%p205_p9), %s1778_s6, 31 }
  0x12   : > { %1245 = vmatprep.mubr.msk.f32.mxu1 (!%p205_p9), %vm1692_vm0, %v1693_v2  ;;  %1350 = vmatprep.mubr.msk.f32.mxu0 (!%p205_p9), %vm1692_vm0, %v1693_v2  ;;  %s1107_s18 = sshll.u32 (!%p205_p9), %s1750_s3, 7  ;;  %s230_s19 = sand.u32 (!%p205_p9), 1, %s1681_s21  }
  0x13   : > { %s231_s24 = scalar_lea.vmem (!%p205_p9), [#allocation3], %s230_s19 }
  0x14   : > { %s1014_s26 = sshll.u32 (!%p205_p9), %s231_s24, 4  ;;  %s2054_s26 = int_to_ptr.vmem [resolvable:$true] %s1014_s26 }
  0x15   : > { %s1627_s12 = scalar_lea.vmem (!%p205_p9), %s2054_s26, 16 }
  0x16   : > { %p1628_p12 = scmp.ne.s32.totalorder (!%p205_p9), %s2054_s26, %s1627_s12 }
  0x18   : > { %s239_s7 = scalar_select %p238_p10, %s1778_s6, 31 }
  0x19   : > { %s2040_s14 = scalar_select %p243_p11, %s1750_s3, 1 }
  0x1a   : > { %s1105_s8 = sshll.u32 %s239_s7, 3  ;;  %s2052_s7 = scalar_lea.hbm %s2108_s4, %s1778_s6 }
  0x1b   : > { %s1791_s11 = scalar_lea.vmem %s2104_s0, %s1105_s8  ;;  %s245_s17 = scalar_lea.vmem %s2105_s1, %s2040_s14 }
  0x1c   : > { %v249_v3 = vld [vmem:[%s1791_s11] sm:$0xff]  ;;  %v250_v4 = vld [vmem:[%s1791_s11 + $0x8] sm:$0xff]  ;;  %v251_v5 = vld [vmem:[%s1791_s11 + $0x10] sm:$0xff]  ;;  %s248_s10 = scalar_lea.vmem %s2109_s5, %s2040_s14  ;;  %p1629_p13 = pnand %p1628_p12, %p1767_p5 }
  0x1d   : > { %v281_v6 = vsel %vm276_vm1, %v249_v3, 0  ;;  %v284_v7 = vsel %vm276_vm1, %v250_v4, 0  ;;  %v252_v8 = vld [vmem:[%s1791_s11 + $0x18] sm:$0xff]  ;;  %v287_v11 = vsel %vm276_vm1, %v251_v5, 0  ;;  %v253_v16 = vld [vmem:[%s1791_s11 + $0x20] sm:$0xff]  ;;  %v254_v17 = vld [vmem:[%s1791_s11 + $0x28] sm:$0xff] }
  0x1e   : > { %v329_v9 = vand.u32 4294901760, %v281_v6  ;;  %v332_v10 = vand.u32 4294901760, %v284_v7  ;;  %v290_v12 = vsel %vm276_vm1, %v252_v8, 0  ;;  %v335_v14 = vand.u32 4294901760, %v287_v11  ;;  %v255_v23 = vld [vmem:[%s1791_s11 + $0x30] sm:$0xff]  ;;  %v256_v24 = vld [vmem:[%s1791_s11 + $0x38] sm:$0xff]  ;;  %p1630_p0 = pneg %p1629_p13 }
  0x1f   : > { %v338_v15 = vand.u32 4294901760, %v290_v12  ;;  %v293_v19 = vsel %vm276_vm1, %v253_v16, 0  ;;  %v296_v20 = vsel %vm276_vm1, %v254_v17, 0  ;;  %v299_v26 = vsel %vm276_vm1, %v255_v23, 0  ;;  %v257_v30 = vld [vmem:[%s1791_s11 + $0x40] sm:$0xff]  ;;  %v258_v31 = vld [vmem:[%s1791_s11 + $0x48] sm:$0xff] }
  0x20   : > { %v1801_v13 = vpack.c.bf16 %v332_v10, %v329_v9  ;;  %v341_v21 = vand.u32 4294901760, %v293_v19  ;;  %v344_v22 = vand.u32 4294901760, %v296_v20  ;;  %v302_v27 = vsel %vm276_vm1, %v256_v24, 0  ;;  %v259_v45 = vld [vmem:[%s1791_s11 + $0x50] sm:$0xff]  ;;  %v260_v46 = vld [vmem:[%s1791_s11 + $0x58] sm:$0xff]  ;;  %v261_v61 = vld [vmem:[%s1791_s11 + $0x60] sm:$0xff] }
  0x21   : > { %v1809_v18 = vpack.c.bf16 %v338_v15, %v335_v14  ;;  %v347_v28 = vand.u32 4294901760, %v299_v26  ;;  %v350_v29 = vand.u32 4294901760, %v302_v27  ;;  %v305_v32 = vsel %vm276_vm1, %v257_v30, 0  ;;  %v262_v62 = vld [vmem:[%s1791_s11 + $0x68] sm:$0xff]  ;;  %s1695_s6 = smov [#allocation3]  }
  0x22   : > { %1425 = vmatpush3.bf16.xpose.msra.mxu1 %v1801_v13  ;;  %1497 = vmatpush3.bf16.xpose.msra.mxu0 %v1801_v13  ;;  %v1819_v25 = vpack.c.bf16 %v344_v22, %v341_v21  ;;  %v308_v33 = vsel %vm276_vm1, %v258_v31, 0  ;;  %v1831_v34 = vsub.f32 %v281_v6, %v329_v9  ;;  %v1833_v35 = vsub.f32 %v284_v7, %v332_v10  ;;  %v265_v7 = vld [vmem:[%s2106_s2] sm:$0x1]  ;;  %v263_v10 = vld [vmem:[%s1791_s11 + $0x70] sm:$0xff]  ;;  %s1631_s13 = sshll.u32 %s1695_s6, 4  ;;  %s1632_s13 = int_to_ptr.vmem [resolvable:$false] %s1631_s13 }
  0x23   : > { %1426 = vmatprep.subr.bf16.mxu1 %v1691_v1  ;;  %1498 = vmatprep.subr.bf16.mxu0 %v1691_v1  ;;  %v1835_v36 = vpack.c.bf16 %v350_v29, %v347_v28  ;;  %v1837_v37 = vsub.f32 %v287_v11, %v335_v14  ;;  %v353_v38 = vand.u32 4294901760, %v305_v32  ;;  %v356_v39 = vand.u32 4294901760, %v308_v33  ;;  %v264_v11 = vld [vmem:[%s1791_s11 + $0x78] sm:$0xff]  ;;  %s999_s11 = scalar_lea.sflag [#allocation4], %s230_s19  ;;  %s1633_s15 = scalar_lea.vmem %s1632_s13, 32 }
  0x24   : > { %v1472_v40 = vpack.c.bf16 %v1833_v35, %v1831_v34  ;;  %v1841_v41 = vsub.f32 %v290_v12, %v338_v15  ;;  %v1843_v42 = vsub.f32 %v293_v19, %v341_v21  ;;  %v1845_v43 = vsub.f32 %v296_v20, %v344_v22  ;;  %p1634_p1 = scmp.lt.s32.totalorder %s2054_s26, %s1632_s13  ;;  %p1635_p2 = scmp.lt.s32.totalorder %s1633_s15, %s1627_s12 }
  0x25   : > { %v1847_v44 = vsub.f32 %v299_v26, %v347_v28  ;;  %v1852_v47 = vsub.f32 %v302_v27, %v350_v29  ;;  %v1855_v48 = vsub.f32 %v305_v32, %v353_v38  ;;  %v1857_v49 = vsub.f32 %v308_v33, %v356_v39 }
  0x26   : > { %v1475_v50 = vpack.c.bf16 %v1841_v41, %v1837_v37  ;;  %v1478_v51 = vpack.c.bf16 %v1845_v43, %v1843_v42  ;;  %v311_v52 = vsel %vm276_vm1, %v259_v45, 0  ;;  %v314_v53 = vsel %vm276_vm1, %v260_v46, 0  ;;  %p1636_p3 = por %p1635_p2, %p1634_p1 }
  0x27   : > { %v1481_v54 = vpack.c.bf16 %v1852_v47, %v1847_v44  ;;  %v1484_v55 = vpack.c.bf16 %v1857_v49, %v1855_v48  ;;  %v1871_v56 = vpack.c.bf16 %v356_v39, %v353_v38  ;;  %v359_v57 = vand.u32 4294901760, %v311_v52 }
  0x28   : > { %v362_v58 = vand.u32 4294901760, %v314_v53  ;;  %v317_v0 = vsel %vm276_vm1, %v261_v61, 0  ;;  %v320_v3 = vsel %vm276_vm1, %v262_v62, 0  ;;  %v278_v12 = vsel %vm276_vm1, %v265_v7, 0  ;;  %p1637_p4 = pnand %p1636_p3, %p1630_p0 }
  0x29   : > { %v1873_v59 = vsub.f32 %v311_v52, %v359_v57  ;;  %v365_v5 = vand.u32 4294901760, %v317_v0  ;;  %v368_v6 = vand.u32 4294901760, %v320_v3  ;;  %v323_v15 = vsel %vm276_vm1, %v263_v10, 0 }
  0x2a   : > { %1428 = vmatpush3.bf16.xpose.msra.mxu1 %v1809_v18  ;;  %1500 = vmatpush3.bf16.xpose.msra.mxu0 %v1809_v18  ;;  %v1875_v60 = vsub.f32 %v314_v53, %v362_v58  ;;  %v1887_v4 = vpack.c.bf16 %v362_v58, %v359_v57  ;;  %v326_v16 = vsel %vm276_vm1, %v264_v11, 0  ;;  %v1907_v17 = vand.u32 4294901760, %v278_v12 }
  0x2b   : > { %1429 = vmatprep.subr.bf16.mxu1 %v1691_v1  ;;  %1501 = vmatprep.subr.bf16.mxu0 %v1691_v1  ;;  %v1892_v8 = vsub.f32 %v317_v0, %v365_v5  ;;  %v1894_v9 = vsub.f32 %v320_v3, %v368_v6  ;;  %v1909_v19 = vpack.c.bf16 %v368_v6, %v365_v5  ;;  %v371_v20 = vand.u32 4294901760, %v323_v15  ;;  %v266_v6 = vld [vmem:[#allocation2] sm:$0x1] }
  0x2c   : > { %v1487_v63 = vpack.c.bf16 %v1875_v60, %v1873_v59  ;;  %v374_v21 = vand.u32 4294901760, %v326_v16  ;;  %v1916_v24 = vsub.f32 %v278_v12, %v1907_v17  ;;  %v422_v26 = vand.u32 4294901760, %v1831_v34 }
  0x2d   : > { %v1490_v14 = vpack.c.bf16 %v1894_v9, %v1892_v8  ;;  %v1911_v22 = vsub.f32 %v323_v15, %v371_v20  ;;  %v429_v27 = vand.u32 4294901760, %v1833_v35  ;;  %v436_v45 = vand.u32 4294901760, %v1837_v37 }
  0x2e   : > { %v1913_v23 = vsub.f32 %v326_v16, %v374_v21  ;;  %v411_v29 = vand.u32 4294901760, %v1916_v24  ;;  %v1927_v30 = vpack.c.bf16 %v374_v21, %v371_v20  ;;  %v423_v31 = vsub.f32 %v1831_v34, %v422_v26 }
  0x2f   : > { %v430_v32 = vsub.f32 %v1833_v35, %v429_v27  ;;  %v443_v46 = vand.u32 4294901760, %v1841_v41  ;;  %v1520_v57 = vpack.c.bf16 %v429_v27, %v422_v26  ;;  %v437_v58 = vsub.f32 %v1837_v37, %v436_v45 }
  0x30   : > { %v1493_v28 = vpack.c.bf16 %v1913_v23, %v1911_v22  ;;  %v412_v33 = vsub.f32 %v1916_v24, %v411_v29  ;;  %v424_v38 = vand.u32 4294901760, %v423_v31  ;;  %v450_v62 = vand.u32 4294901760, %v1843_v42 }
  0x31   : > { %v431_v39 = vand.u32 4294901760, %v430_v32  ;;  %v444_v61 = vsub.f32 %v1841_v41, %v443_v46  ;;  %v438_v0 = vand.u32 4294901760, %v437_v58  ;;  %v457_v5 = vand.u32 4294901760, %v1845_v43 }
  0x32   : > { %1431 = vmatpush3.bf16.xpose.msra.mxu1 %v1819_v25  ;;  %1503 = vmatpush3.bf16.xpose.msra.mxu0 %v1819_v25  ;;  %v413_v52 = vand.u32 4294901760, %v412_v33  ;;  %v1694_v7 = vmov 0   ;;  %v1523_v11 = vpack.c.bf16 %v443_v46, %v436_v45  ;;  %v451_v12 = vsub.f32 %v1843_v42, %v450_v62 }
  0x33   : > { %1432 = vmatprep.subr.bf16.mxu1 %v1691_v1  ;;  %1504 = vmatprep.subr.bf16.mxu0 %v1691_v1  ;;  %v1448_v53 = vpack.c.bf16 %v431_v39, %v424_v38  ;;  %v445_v3 = vand.u32 4294901760, %v444_v61  ;;  %v458_v15 = vsub.f32 %v1845_v43, %v457_v5  ;;  %v464_v21 = vand.u32 4294901760, %v1847_v44 }
  0x34   : > { %1620 = vset.pattern.permute.xlu0 %v1694_v7  ;;  %v452_v16 = vand.u32 4294901760, %v451_v12  ;;  %v471_v26 = vand.u32 4294901760, %v1852_v47  ;;  %v478_v39 = vand.u32 4294901760, %v1855_v48  ;;  %v485_v45 = vand.u32 4294901760, %v1857_v49 }
  0x35   : > { %v1451_v10 = vpack.c.bf16 %v445_v3, %v438_v0  ;;  %269 = vperm.xlu0 %1620, %v266_v6   ;;  %v459_v20 = vand.u32 4294901760, %v458_v15  ;;  %v465_v31 = vsub.f32 %v1847_v44, %v464_v21  ;;  %v499_v0 = vand.u32 4294901760, %v1875_v60 }
  0x36   : > { %v472_v32 = vsub.f32 %v1852_v47, %v471_v26  ;;  %v506_v12 = vand.u32 4294901760, %v1892_v8  ;;  %v513_v15 = vand.u32 4294901760, %v1894_v9 }
  0x37   : > { %v1454_v27 = vpack.c.bf16 %v459_v20, %v452_v16  ;;  %v466_v33 = vand.u32 4294901760, %v465_v31  ;;  %v500_v7 = vsub.f32 %v1875_v60, %v499_v0  ;;  %v520_v31 = vand.u32 4294901760, %v1911_v22 }
  0x38   : > { %v473_v38 = vand.u32 4294901760, %v472_v32  ;;  %v527_v32 = vand.u32 4294901760, %v1913_v23 }
  0x3a   : > { %1434 = vmatpush3.bf16.xpose.msra.mxu1 %v1835_v36  ;;  %1506 = vmatpush3.bf16.xpose.msra.mxu0 %v1835_v36  ;;  %v1457_v46 = vpack.c.bf16 %v473_v38, %v466_v33  ;;  %v1538_v38 = vpack.c.bf16 %v513_v15, %v506_v12 }
  0x3b   : > { %1435 = vmatprep.subr.bf16.mxu1 %v1691_v1  ;;  %1507 = vmatprep.subr.bf16.mxu0 %v1691_v1 }
  0x42   : > { %1437 = vmatpush3.bf16.xpose.msra.mxu1 %v1871_v56  ;;  %1509 = vmatpush3.bf16.xpose.msra.mxu0 %v1871_v56 }
  0x43   : > { %1438 = vmatprep.subr.bf16.mxu1 %v1691_v1  ;;  %1510 = vmatprep.subr.bf16.mxu0 %v1691_v1 }
  0x4a   : > { %1440 = vmatpush3.bf16.xpose.msra.mxu1 %v1887_v4  ;;  %1512 = vmatpush3.bf16.xpose.msra.mxu0 %v1887_v4 }
  0x4b   : > { %1441 = vmatprep.subr.bf16.mxu1 %v1691_v1  ;;  %1513 = vmatprep.subr.bf16.mxu0 %v1691_v1 }
  0x52   : > { %1443 = vmatpush3.bf16.xpose.msra.mxu1 %v1909_v19  ;;  %1515 = vmatpush3.bf16.xpose.msra.mxu0 %v1909_v19 }
  0x53   : > { %1444 = vmatprep.subr.bf16.mxu1 %v1691_v1  ;;  %1516 = vmatprep.subr.bf16.mxu0 %v1691_v1 }
  0x5a   : > { %1446 = vmatpush3.bf16.xpose.msra.mxu1 %v1927_v30  ;;  %1518 = vmatpush3.bf16.xpose.msra.mxu0 %v1927_v30 }
  0x5b   : > { %1447 = vmatprep.subr.bf16.mxu1 %v1691_v1  ;;  %1519 = vmatprep.subr.bf16.mxu0 %v1691_v1 }
  0x61   : > { %1246 = vmatmul.mubr.f32.vlgmr.msra.gmra.mrb[0].mxu1 %v413_v52  ;;  %1351 = vmatmul.mubr.f32.vlgmr.msra.gmra.mrb[0].mxu0 %v411_v29  ;;  %v1526_v29 = vpack.c.bf16 %v457_v5, %v450_v62  ;;  %v1529_v52 = vpack.c.bf16 %v471_v26, %v464_v21  ;;  %v492_v62 = vand.u32 4294901760, %v1873_v59  ;;  %v1532_v5 = vpack.c.bf16 %v485_v45, %v478_v39 }
  0x62   : > { %1449 = vmatpush3.bf16.xpose.msra.mxu1 %v1448_v53  ;;  %1521 = vmatpush3.bf16.xpose.msra.mxu0 %v1520_v57  ;;  %v479_v53 = vsub.f32 %v1855_v48, %v478_v39  ;;  %v486_v57 = vsub.f32 %v1857_v49, %v485_v45  ;;  %v507_v21 = vsub.f32 %v1892_v8, %v506_v12 }
  0x63   : > { %1450 = vmatprep.subr.bf16.mxu1 %v1691_v1  ;;  %1522 = vmatprep.subr.bf16.mxu0 %v1691_v1  ;;  %v493_v6 = vsub.f32 %v1873_v59, %v492_v62  ;;  %v1535_v20 = vpack.c.bf16 %v499_v0, %v492_v62  ;;  %v514_v26 = vsub.f32 %v1894_v9, %v513_v15 }
  0x64   : > { %1280 = vmatprep.mubr.msk.f32.mxu1 %vm1692_vm0, %v1693_v2  ;;  %1385 = vmatprep.mubr.msk.f32.mxu0 %vm1692_vm0, %v1693_v2  ;;  %v480_v58 = vand.u32 4294901760, %v479_v53  ;;  %v487_v61 = vand.u32 4294901760, %v486_v57  ;;  %v521_v39 = vsub.f32 %v1911_v22, %v520_v31  ;;  %v528_v45 = vsub.f32 %v1913_v23, %v527_v32 }
  0x65   : > { %v1541_v57 = vpack.c.bf16 %v527_v32, %v520_v31 }
  0x66   : > { %v1460_v3 = vpack.c.bf16 %v487_v61, %v480_v58 }
  0x6a   : > { %1452 = vmatpush3.bf16.xpose.msra.mxu1 %v1451_v10  ;;  %1524 = vmatpush3.bf16.xpose.msra.mxu0 %v1523_v11  ;;  %v494_v10 = vand.u32 4294901760, %v493_v6  ;;  %v501_v11 = vand.u32 4294901760, %v500_v7 }
  0x6b   : > { %1453 = vmatprep.subr.bf16.mxu1 %v1691_v1  ;;  %1525 = vmatprep.subr.bf16.mxu0 %v1691_v1 }
  0x6c   : > { %v1463_v16 = vpack.c.bf16 %v501_v11, %v494_v10 }
  0x72   : > { %1455 = vmatpush3.bf16.xpose.msra.mxu1 %v1454_v27  ;;  %1527 = vmatpush3.bf16.xpose.msra.mxu0 %v1526_v29  ;;  %v508_v27 = vand.u32 4294901760, %v507_v21  ;;  %v515_v29 = vand.u32 4294901760, %v514_v26 }
  0x73   : > { %1456 = vmatprep.subr.bf16.mxu1 %v1691_v1  ;;  %1528 = vmatprep.subr.bf16.mxu0 %v1691_v1 }
  0x74   : > { %v1466_v33 = vpack.c.bf16 %v515_v29, %v508_v27 }
  0x7a   : > { %1458 = vmatpush3.bf16.xpose.msra.mxu1 %v1457_v46  ;;  %1530 = vmatpush3.bf16.xpose.msra.mxu0 %v1529_v52  ;;  %v522_v46 = vand.u32 4294901760, %v521_v39  ;;  %v529_v52 = vand.u32 4294901760, %v528_v45 }
  0x7b   : > { %1459 = vmatprep.subr.bf16.mxu1 %v1691_v1  ;;  %1531 = vmatprep.subr.bf16.mxu0 %v1691_v1 }
  0x7c   : > { %v1469_v53 = vpack.c.bf16 %v529_v52, %v522_v46 }
  0x82   : > { %1461 = vmatpush3.bf16.xpose.msra.mxu1 %v1460_v3  ;;  %1533 = vmatpush3.bf16.xpose.msra.mxu0 %v1532_v5 }
  0x83   : > { %1462 = vmatprep.subr.bf16.mxu1 %v1691_v1  ;;  %1534 = vmatprep.subr.bf16.mxu0 %v1691_v1 }
  0x8a   : > { %1464 = vmatpush3.bf16.xpose.msra.mxu1 %v1463_v16  ;;  %1536 = vmatpush3.bf16.xpose.msra.mxu0 %v1535_v20 }
  0x8b   : > { %1465 = vmatprep.subr.bf16.mxu1 %v1691_v1  ;;  %1537 = vmatprep.subr.bf16.mxu0 %v1691_v1 }
  0x92   : > { %1467 = vmatpush3.bf16.xpose.msra.mxu1 %v1466_v33  ;;  %1539 = vmatpush3.bf16.xpose.msra.mxu0 %v1538_v38 }
  0x93   : > { %1468 = vmatprep.subr.bf16.mxu1 %v1691_v1  ;;  %1540 = vmatprep.subr.bf16.mxu0 %v1691_v1 }
  0x9a   : > { %1470 = vmatpush3.bf16.xpose.msra.mxu1 %v1469_v53  ;;  %1542 = vmatpush3.bf16.xpose.msra.mxu0 %v1541_v57 }
  0x9b   : > { %1471 = vmatprep.subr.bf16.mxu1 %v1691_v1  ;;  %1543 = vmatprep.subr.bf16.mxu0 %v1691_v1 }
  0xa1   : > { %1281 = vmatmul.mubr.f32.vlgmr.msra.gmra.mrb[0].mxu1 %v1907_v17  ;;  %1386 = vmatmul.mubr.f32.vlgmr.msra.gmra.mrb[0].mxu0 %v1907_v17 }
  0xa2   : > { %1473 = vmatpush3.bf16.xpose.msra.mxu1 %v1472_v40  ;;  %1545 = vmatpush3.bf16.xpose.msra.mxu0 %v1801_v13 }
  0xa3   : > { %1474 = vmatprep.subr.bf16.mxu1 %v1691_v1  ;;  %1546 = vmatprep.subr.bf16.mxu0 %v1691_v1 }
  0xa4   : > { %1315 = vmatprep.mubr.msk.f32.mxu1 %vm1692_vm0, %v1693_v2  ;;  %1420 = vmatprep.mubr.msk.f32.mxu0 %vm1692_vm0, %v1693_v2  ;;  %v272_v2 = vlaneseq }
  0xa6   : > { %v273_v13 = vshrl.u32 %v272_v2, 7 }
  0xaa   : > { %1476 = vmatpush3.bf16.xpose.msra.mxu1 %v1475_v50  ;;  %1548 = vmatpush3.bf16.xpose.msra.mxu0 %v1809_v18  ;;  %v274_v18 = vsub.s32 0, %v273_v13  ;;  %v991_v50 = vand.u32 127, %v272_v2 }
  0xab   : > { %1477 = vmatprep.subr.bf16.mxu1 %v1691_v1  ;;  %1549 = vmatprep.subr.bf16.mxu0 %v1691_v1 }
  0xb2   : > { %1479 = vmatpush3.bf16.xpose.msra.mxu1 %v1478_v51  ;;  %1551 = vmatpush3.bf16.xpose.msra.mxu0 %v1819_v25  ;;  %v982_v51 = vld [vmem:[%s245_s17] sm:$0x1] }
  0xb3   : > { %1480 = vmatprep.subr.bf16.mxu1 %v1691_v1  ;;  %1552 = vmatprep.subr.bf16.mxu0 %v1691_v1 }
  0xb4   : > { %v270_v25 = vpop.permute.xlu0 %269 }
  0xb5   : > { %v275_v34 = vrot.slane %v270_v25, %v274_v18 }
  0xba   : > { %1482 = vmatpush3.bf16.xpose.msra.mxu1 %v1481_v54  ;;  %1554 = vmatpush3.bf16.xpose.msra.mxu0 %v1835_v36  ;;  %v992_v54 = vstv %s1107_s18 }
  0xbb   : > { %1483 = vmatprep.subr.bf16.mxu1 %v1691_v1  ;;  %1555 = vmatprep.subr.bf16.mxu0 %v1691_v1  ;;  %v993_v59 = vadd.s32 %v992_v54, %v991_v50 }
  0xbd   : > { %vm994_vm3 = vcmp.lt.s32.totalorder %v993_v59, 250 }
  0xc2   : > { %1485 = vmatpush3.bf16.xpose.msra.mxu1 %v1484_v55  ;;  %1557 = vmatpush3.bf16.xpose.msra.mxu0 %v1871_v56 }
  0xc3   : > { %1486 = vmatprep.subr.bf16.mxu1 %v1691_v1  ;;  %1558 = vmatprep.subr.bf16.mxu0 %v1691_v1 }
  0xca   : > { %1488 = vmatpush3.bf16.xpose.msra.mxu1 %v1487_v63  ;;  %1560 = vmatpush3.bf16.xpose.msra.mxu0 %v1887_v4 }
  0xcb   : > { %1489 = vmatprep.subr.bf16.mxu1 %v1691_v1  ;;  %1561 = vmatprep.subr.bf16.mxu0 %v1691_v1 }
  0xd2   : > { %1491 = vmatpush3.bf16.xpose.msra.mxu1 %v1490_v14  ;;  %1563 = vmatpush3.bf16.xpose.msra.mxu0 %v1909_v19 }
  0xd3   : > { %1492 = vmatprep.subr.bf16.mxu1 %v1691_v1  ;;  %1564 = vmatprep.subr.bf16.mxu0 %v1691_v1 }
  0xda   : > { %1494 = vmatpush3.bf16.xpose.msra.mxu1 %v1493_v28  ;;  %1566 = vmatpush3.bf16.xpose.msra.mxu0 %v1927_v30 }
  0xe1   : > { %1316 = vmatmul.mubr.f32.vlgmr.msra.gmra.mrb[0].mxu1 %v1916_v24  ;;  %1421 = vmatmul.mubr.f32.vlgmr.msra.gmra.mrb[0].mxu0 %v1907_v17 }
 0x1b4   : > { %v670_v35 = vpop.f32.mrb[0].mxu1  ;;  %v965_v36 = vpop.f32.mrb[0].mxu0 }
 0x1b5   : > { %v1567_v1 = vadd.f32 %v670_v35, %v275_v34  ;;  %v1317_v37 = vpop.f32.mrb[1].mxu1  ;;  %v1422_v40 = vpop.f32.mrb[1].mxu0 }
 0x1b7   : > { %v1568_v41 = vadd.f32 %v1567_v1, %v965_v36 }
 0x1b9   : > { %v1106_v42 = vclamps-f32 %v1568_v41, 50.0  ;;  %v983_v55 = vmax.f32 %v1568_v41, 0.0  ;;  %v984_v56 = vmul.f32 %v1568_v41, %v982_v51 }
 0x1bb   : > { %v971_v43 = vand.u32 2147483647, %v1106_v42  ;;  %v985_v8 = vsub.f32 %v983_v55, %v984_v56  ;;  %vm978_vm2 = vcmp.ge.f32.partialorder %v1106_v42, 0.0 }
 0x1bd   : > { %v972_v44 = vsub.f32 0.0, %v971_v43 }
 0x1bf   : > { %v973_v47 = vmul.f32 1.442695, %v972_v44 }
 0x1c1   : > { %1621 = vpow2.f32 %v973_v47 }
 0x1cb   : > { %v1622_v48 = vpop.eup %1621 }
 0x1cc   : > { %v975_v49 = vadd.f32 1.0, %v1622_v48 }
 0x1ce   : > { %1623 = vrcp.f32 %v975_v49 }
 0x1cf   : > { %1625 = vlog2.f32 %v975_v49 }
 0x1d8   : > { %v1624_v60 = vpop.eup %1623 }
 0x1d9   : > { %v1626_v63 = vpop.eup %1625  ;;  %v979_v4 = vmul.f32 %v1624_v60, %v1622_v48 }
 0x1da   : > { %v987_v9 = vmul.f32 0.6931472, %v1626_v63 }
 0x1db   : > { %v980_v14 = vsel %vm978_vm2, %v1624_v60, %v979_v4 }
 0x1dc   : > { %v988_v17 = vadd.f32 %v987_v9, %v985_v8  ;;  %981 = vst [vmem:[%s231_s24] sm:$0x1] %v980_v14 }
 0x1dd   : > { %1640 = shalt.err (!%p1637_p4)
}
 0x1de   : > { %s1641_s16 = scalar_lea.hbm %s2052_s7, 16  ;;  %s1645_s19 = scalar_lea.hbm %s2108_s4, 32 }
 0x1df   : > { %p1642_p7 = scmp.ne.s32.totalorder %s2052_s7, %s1641_s16  ;;  %p1646_p10 = scmp.lt.u32.totalorder %s2052_s7, %s2108_s4 }
 0x1e0   : > { %p1647_p11 = scmp.lt.u32.totalorder %s1645_s19, %s1641_s16  ;;  %p1649_p13 = scmp.lt.u32.totalorder %s1641_s16, %s2052_s7 }
 0x1e1   : > { %p1643_p8 = pnand %p1642_p7, %p1767_p5 }
 0x1e2   : > { %p1648_p12 = por %p1647_p11, %p1646_p10 }
 0x1e3   : > { %p1644_p9 = pneg %p1643_p8 }
 0x1e4   : > { %p1650_p0 = por %p1649_p13, %p1648_p12 }
 0x1e6   : > { %p1651_p1 = pnand %p1650_p0, %p1644_p9 }
 0x1e8   : > { %1654 = shalt.err (!%p1651_p1)
}
 0x1e9   : > { %1577 = dma.vmem_to_hbm [thread:$0]  (%p1767_p5), %s2054_s26, 16, %s2052_s7, %s999_s11   ;;  %v995_v19 = vsel %vm994_vm3, %v988_v17, 0.0 }
 0x1ea   : > { %997 = vst [vmem:[%s248_s10] sm:$0x1] %v995_v19 }
 0x1eb PF: > { %p1583_p2 = scmp.ge.s32.totalorder %s1689_s23, 2  ;;  %s1029_s9 = sand.u32 1, %s1677_s20  }
 0x1ec   : > { %s1030_s29 = scalar_lea.sflag [#allocation4], %s1029_s9 }
 0x1ed   : > { %p1580_p3 = pnand %p1583_p2, %p1771_p6 }
 0x1ef   : > { %1672 = dma.done.wait (!%p1580_p3), %s1030_s29, 16  }
 0x1f0   : > { %1674 = vsyncadd (!%p1580_p3), %s1030_s29, 4294967280  ;;  %p18_p5 = scmp.ge.s32.totalorder %s1754_s25, 4   ;;  %s2112_s20 = smov %s1681_s21 }
 0x1f1   : > { %s2113_s21 = smov %s1685_s22  ;;  %s2114_s22 = smov %s1765_s28 }
 0x1f2   : > { %s2115_s23 = smov %s1754_s25  ;;  %20 = sbr.rel (!%p18_p5) target bundleno = 6 (0x6), region = 86 }
 0x1f9   :  { %1040 = vsyncpa [#allocation4], 1 }
 0x1fa   :  { %1042 = vsyncpa [#allocation4 + $0x1], 1 }

</bundles_post_ra>
